<compile_context>
chip_gen: v5e
topology: v5e:2x2
jax: 0.10.0
libtpu: 0.0.40
codegen_flags: <defaults>
</compile_context>

<pallas_src>
import functools

import jax
import jax.numpy as jnp
import numpy as np
from jax import lax
from jax.experimental import pallas as pl
from jax.experimental.pallas import tpu as pltpu

EPS = 1e-5


def _bn_act(v, g_ref, b_ref, relu):
    """Single-pass training-mode BatchNorm over the lane axis (per channel row)."""
    n = v.shape[1]
    s1 = jnp.sum(v, axis=1, keepdims=True)
    s2 = jnp.sum(v * v, axis=1, keepdims=True)
    mean = s1 * (1.0 / n)
    var = s2 * (1.0 / n) - mean * mean
    scale = g_ref[...] * lax.rsqrt(var + EPS)
    shift = b_ref[...] - mean * scale
    out = v * scale + shift
    if relu:
        out = jnp.maximum(out, 0.0)
    return out


def _mbv3_kernel(x_ref, mask_ref, sel_ref,
                 w_inv_ref, g1_ref, b1_ref,
                 w_dw_ref, g2_ref, b2_ref,
                 w_ser_ref, b_ser_ref, w_see_ref, b_see_ref,
                 w_pl_ref, g3_ref, b3_ref,
                 o_ref, *,
                 N, H, W, C, Ci, C_out, K, stride,
                 has_inv, use_se, use_shortcut):
    P = K // 2
    HW = H * W
    L = N * HW
    Ho = (H + 2 * P - K) // stride + 1
    Wo = (W + 2 * P - K) // stride + 1
    HoWo = Ho * Wo

    # ---- gather NCHW input into channel-major (C, N*H*W): lanes = spatial ----
    x2 = jnp.concatenate([x_ref[n] for n in range(N)], axis=-1)

    # ---- 1x1 expansion conv (no bias) + BN + ReLU ----
    if has_inv:
        y = jnp.dot(w_inv_ref[...], x2, preferred_element_type=jnp.float32)
        y = _bn_act(y, g1_ref, b1_ref, relu=True)
    else:
        y = x2

    # ---- depthwise KxK conv: K*K lane rolls (XLU) + boundary masks (VPU) ----
    w_dw = w_dw_ref[...]            # (Ci, K*K), tap (dy,dx) at column dy*K+dx
    masks = mask_ref[...]           # (K*K, N*H*W) 0/1 validity masks
    acc = jnp.zeros((Ci, L), jnp.float32)
    for dy in range(K):
        for dx in range(K):
            t = dy * K + dx
            s = (dy - P) * W + (dx - P)                  # source-lane offset
            shifted = pltpu.roll(y, (-s) % L, axis=1) if s != 0 else y
            acc = acc + shifted * masks[t:t + 1, :] * w_dw[:, t:t + 1]
    if stride > 1:
        # compact to the strided output lanes with a 0/1 selection matmul
        acc = jnp.dot(acc, sel_ref[...], preferred_element_type=jnp.float32)
    d = _bn_act(acc, g2_ref, b2_ref, relu=True)

    # ---- squeeze-and-excite (global avg pool -> 1x1 -> ReLU -> 1x1 -> sigmoid) ----
    if use_se:
        pooled = jnp.concatenate(
            [jnp.sum(d[:, n * HoWo:(n + 1) * HoWo], axis=1, keepdims=True)
             * (1.0 / HoWo) for n in range(N)], axis=-1)              # (Ci, N)
        s1 = jnp.maximum(
            jnp.dot(w_ser_ref[...], pooled, preferred_element_type=jnp.float32)
            + b_ser_ref[...], 0.0)                                    # (mid, N)
        s2 = jax.nn.sigmoid(
            jnp.dot(w_see_ref[...], s1, preferred_element_type=jnp.float32)
            + b_see_ref[...])                                         # (Ci, N)
        se_scale = jnp.concatenate(
            [jnp.broadcast_to(s2[:, n:n + 1], (Ci, HoWo)) for n in range(N)],
            axis=-1)
        d = d * se_scale

    # ---- 1x1 projection conv (no bias) + BN (no activation) ----
    p = jnp.dot(w_pl_ref[...], d, preferred_element_type=jnp.float32)
    p = _bn_act(p, g3_ref, b3_ref, relu=False)

    # ---- residual shortcut (stride==1 and C==C_out) ----
    if use_shortcut:
        p = p + x2

    # ---- scatter back to (N, C_out, Ho*Wo): 128-aligned, unmasked stores ----
    for n in range(N):
        o_ref[n] = p[:, n * HoWo:(n + 1) * HoWo]


def mobilenetv3_block(x_nchw, params, *, expansion, C, C_out, stride,
                      kernel_size, use_se):
    N, _, H, W = x_nchw.shape
    Ci = int(C * expansion)
    K = kernel_size
    P = K // 2
    Ho = (H + 2 * P - K) // stride + 1
    Wo = (W + 2 * P - K) // stride + 1
    HW, L, Lo = H * W, N * H * W, N * Ho * Wo
    has_inv = expansion != 1
    use_shortcut = (stride == 1 and C == C_out)

    # free reshape: NCHW -> (N, C, H*W), no HBM-level layout change
    x3 = x_nchw.reshape(N, C, HW).astype(jnp.float32)

    # host-side static helper tensors (tiny)
    lane = np.arange(L)
    h_idx = (lane // W) % H
    w_idx = lane % W
    mask = np.zeros((K * K, L), np.float32)
    for dy in range(K):
        for dx in range(K):
            ok = ((h_idx + dy - P >= 0) & (h_idx + dy - P < H)
                  & (w_idx + dx - P >= 0) & (w_idx + dx - P < W))
            mask[dy * K + dx] = ok
    if stride > 1:
        sel = np.zeros((L, Lo), np.float32)
        for n in range(N):
            for ho in range(Ho):
                for wo in range(Wo):
                    sel[n * HW + ho * stride * W + wo * stride,
                        n * Ho * Wo + ho * Wo + wo] = 1.0
    else:
        sel = np.zeros((1, 1), np.float32)     # unused placeholder

    kernel = functools.partial(
        _mbv3_kernel, N=N, H=H, W=W, C=C, Ci=Ci, C_out=C_out, K=K,
        stride=stride, has_inv=has_inv, use_se=use_se,
        use_shortcut=use_shortcut)

    args = (x3, jnp.asarray(mask), jnp.asarray(sel),
            params['w_inv'], params['g1'], params['b1'],
            params['w_dw'], params['g2'], params['b2'],
            params['w_ser'], params['b_ser'], params['w_see'], params['b_see'],
            params['w_pl'], params['g3'], params['b3'])

    mid = params['w_ser'].shape[0]
    param_elems = sum(int(p.size) for p in params.values())
    cost = pl.CostEstimate(
        flops=int(2 * L * C * Ci + (2 * K * K + 12) * L * Ci
                  + 2 * Lo * Ci * C_out + 4 * N * Ci * mid),
        transcendentals=int(N * (mid + Ci) + 2 * Ci + C_out),
        bytes_accessed=int(4 * (int(x3.size) + C_out * Lo
                                + int(mask.size) + int(sel.size) + param_elems)))

    out = pl.pallas_call(
        kernel,
        out_shape=jax.ShapeDtypeStruct((N, C_out, Ho * Wo), jnp.float32),
        in_specs=[pl.BlockSpec(memory_space=pltpu.MemorySpace.VMEM)
                  for _ in args],
        out_specs=pl.BlockSpec(memory_space=pltpu.MemorySpace.VMEM),
        compiler_params=pltpu.CompilerParams(
            vmem_limit_bytes=32 * 1024 * 1024),
        cost_estimate=cost,
    )(*args)
    return out.reshape(N, C_out, Ho, Wo)


def init_params(key, C, Ci, C_out, K, reduction=4):
    mid = max(1, Ci // reduction)
    ks = jax.random.split(key, 7)

    def rnd(k, shape, scale=0.1):
        return scale * jax.random.normal(k, shape, jnp.float32)

    return dict(
        # 1x1 expansion conv weight, channel-major: (C_inner, C_in)
        w_inv=rnd(ks[0], (Ci, C)),
        g1=jnp.ones((Ci, 1), jnp.float32), b1=jnp.zeros((Ci, 1), jnp.float32),
        # depthwise KxK weight: (C_inner, K*K), column dy*K+dx == tap (dy,dx)
        w_dw=rnd(ks[1], (Ci, K * K)),
        g2=jnp.ones((Ci, 1), jnp.float32), b2=jnp.zeros((Ci, 1), jnp.float32),
        # SE reduce/expand 1x1 convs (with bias), channel-major
        w_ser=rnd(ks[2], (mid, Ci)), b_ser=rnd(ks[3], (mid, 1)),
        w_see=rnd(ks[4], (Ci, mid)), b_see=rnd(ks[5], (Ci, 1)),
        # pointwise projection 1x1 conv weight: (C_out, C_inner)
        w_pl=rnd(ks[6], (C_out, Ci)),
        g3=jnp.ones((C_out, 1), jnp.float32), b3=jnp.zeros((C_out, 1), jnp.float32),
    )


def reference(x_nchw, params, *, expansion, C, C_out, stride, kernel_size, use_se):
    # Pure-JAX (non-Pallas) reference of the same forward pass, for validation.
    x = jnp.transpose(x_nchw, (0, 2, 3, 1)).astype(jnp.float32)   # NHWC
    N, H, W, _ = x.shape
    Ci = int(C * expansion)
    K = kernel_size
    P = K // 2

    def bn(v, g, b):
        m = v.mean(0, keepdims=True)
        var = ((v - m) ** 2).mean(0, keepdims=True)
        return (v - m) / jnp.sqrt(var + EPS) * g.reshape(1, -1) + b.reshape(1, -1)

    x2 = x.reshape(-1, C)
    if expansion != 1:
        y2 = jnp.maximum(bn(x2 @ params['w_inv'].T, params['g1'], params['b1']), 0.0)
    else:
        y2 = x2
    y4 = y2.reshape(N, H, W, Ci)
    yp = jnp.pad(y4, ((0, 0), (P, P), (P, P), (0, 0)))
    acc = jnp.zeros((N, H, W, Ci), jnp.float32)
    for dy in range(K):
        for dx in range(K):
            acc = acc + (yp[:, dy:dy + H, dx:dx + W, :]
                         * params['w_dw'][:, dy * K + dx].reshape(1, 1, 1, Ci))
    if stride > 1:
        acc = acc[:, ::stride, ::stride, :]
    Ho, Wo = acc.shape[1], acc.shape[2]
    d2 = jnp.maximum(bn(acc.reshape(-1, Ci), params['g2'], params['b2']), 0.0)
    if use_se:
        d3 = d2.reshape(N, Ho * Wo, Ci)
        pooled = d3.mean(1)
        s1 = jnp.maximum(pooled @ params['w_ser'].T + params['b_ser'].reshape(1, -1), 0.0)
        s2 = jax.nn.sigmoid(s1 @ params['w_see'].T + params['b_see'].reshape(1, -1))
        d2 = (d3 * s2.reshape(N, 1, Ci)).reshape(-1, Ci)
    p2 = bn(d2 @ params['w_pl'].T, params['g3'], params['b3'])
    if stride == 1 and C == C_out:
        p2 = p2 + x2
    return jnp.transpose(p2.reshape(N, Ho, Wo, C_out), (0, 3, 1, 2))


if __name__ == "__main__":
    # MobileNetV3Block(expansion=2, C=4, C_out=4, stride=1, kernel_size=3,
    #                  affine=True, use_se=True)
    N, C, H, W = 2, 4, 16, 16
    expansion, C_out, stride, K = 2, 4, 1, 3
    use_se = True
    Ci = int(C * expansion)

    key = jax.random.PRNGKey(0)
    kx, kp = jax.random.split(key)
    x = jax.random.normal(kx, (N, C, H, W), jnp.float32)      # NCHW, like PyTorch
    params = init_params(kp, C, Ci, C_out, K)

    out = mobilenetv3_block(x, params, expansion=expansion, C=C, C_out=C_out,
                            stride=stride, kernel_size=K, use_se=use_se)
    out = jax.block_until_ready(out)

    ref = reference(x, params, expansion=expansion, C=C, C_out=C_out,
                    stride=stride, kernel_size=K, use_se=use_se)
    assert out.shape == (N, C_out, H, W), out.shape
    assert jnp.allclose(out, ref, atol=2e-4, rtol=2e-4), \
        float(jnp.abs(out - ref).max())
    print("KERNEL_OK")
</pallas_src>

<mosaic_0001>
module attributes {stable_mosaic.version = 11 : i64} {
  func.func @_mbv3_kernel(%arg0: memref<2x4x256xf32, #tpu.memory_space<vmem>>, %arg1: memref<9x512xf32, #tpu.memory_space<vmem>>, %arg2: memref<1x1xf32, #tpu.memory_space<vmem>>, %arg3: memref<8x4xf32, #tpu.memory_space<vmem>>, %arg4: memref<8x1xf32, #tpu.memory_space<vmem>>, %arg5: memref<8x1xf32, #tpu.memory_space<vmem>>, %arg6: memref<8x9xf32, #tpu.memory_space<vmem>>, %arg7: memref<8x1xf32, #tpu.memory_space<vmem>>, %arg8: memref<8x1xf32, #tpu.memory_space<vmem>>, %arg9: memref<2x8xf32, #tpu.memory_space<vmem>>, %arg10: memref<2x1xf32, #tpu.memory_space<vmem>>, %arg11: memref<8x2xf32, #tpu.memory_space<vmem>>, %arg12: memref<8x1xf32, #tpu.memory_space<vmem>>, %arg13: memref<4x8xf32, #tpu.memory_space<vmem>>, %arg14: memref<4x1xf32, #tpu.memory_space<vmem>>, %arg15: memref<4x1xf32, #tpu.memory_space<vmem>>, %arg16: memref<2x4x256xf32, #tpu.memory_space<vmem>>) attributes {dimension_semantics = [], scalar_prefetch = 0 : i64, scratch_operands = 0 : i64, tpu.core_type = #tpu.core_type<tc>} {
    %c0 = arith.constant 0 : index
    %c0_0 = arith.constant 0 : index
    %c0_1 = arith.constant 0 : index
    %0 = vector.load %arg0[%c0, %c0_0, %c0_1] : memref<2x4x256xf32, #tpu.memory_space<vmem>>, vector<1x4x256xf32>
    %1 = vector.shape_cast %0 : vector<1x4x256xf32> to vector<4x256xf32>
    %c1 = arith.constant 1 : index
    %c0_2 = arith.constant 0 : index
    %c0_3 = arith.constant 0 : index
    %2 = vector.load %arg0[%c1, %c0_2, %c0_3] : memref<2x4x256xf32, #tpu.memory_space<vmem>>, vector<1x4x256xf32>
    %3 = vector.shape_cast %2 : vector<1x4x256xf32> to vector<4x256xf32>
    %4 = tpu.concatenate %1, %3 in 1 : vector<4x256xf32>, vector<4x256xf32> -> vector<4x512xf32>
    %c0_4 = arith.constant 0 : index
    %c0_5 = arith.constant 0 : index
    %5 = vector.load %arg3[%c0_4, %c0_5] : memref<8x4xf32, #tpu.memory_space<vmem>>, vector<8x4xf32>
    %cst = arith.constant dense<0.000000e+00> : vector<8x512xf32>
    %6 = tpu.matmul %5, %4, %cst {dimension_numbers = #tpu.dot_dimension_numbers<[1], [0], [0], [1], [0, 0, 1, 1], [], []>} : vector<8x4xf32>, vector<4x512xf32>, vector<8x512xf32> -> vector<8x512xf32>
    %cst_6 = arith.constant dense<0.000000e+00> : vector<8xf32>
    %7 = vector.multi_reduction <add>, %6, %cst_6 [1] : vector<8x512xf32> to vector<8xf32>
    %8 = vector.shape_cast %7 : vector<8xf32> to vector<8x1xf32>
    %9 = arith.mulf %6, %6 : vector<8x512xf32>
    %cst_7 = arith.constant dense<0.000000e+00> : vector<8xf32>
    %10 = vector.multi_reduction <add>, %9, %cst_7 [1] : vector<8x512xf32> to vector<8xf32>
    %11 = vector.shape_cast %10 : vector<8xf32> to vector<8x1xf32>
    %cst_8 = arith.constant 0.001953125 : f32
    %12 = vector.broadcast %cst_8 : f32 to vector<8x1xf32>
    %13 = arith.mulf %8, %12 : vector<8x1xf32>
    %cst_9 = arith.constant 0.001953125 : f32
    %14 = vector.broadcast %cst_9 : f32 to vector<8x1xf32>
    %15 = arith.mulf %11, %14 : vector<8x1xf32>
    %16 = arith.mulf %13, %13 : vector<8x1xf32>
    %17 = arith.subf %15, %16 : vector<8x1xf32>
    %c0_10 = arith.constant 0 : index
    %c0_11 = arith.constant 0 : index
    %18 = vector.load %arg4[%c0_10, %c0_11] : memref<8x1xf32, #tpu.memory_space<vmem>>, vector<8x1xf32>
    %cst_12 = arith.constant 9.99999974E-6 : f32
    %19 = vector.broadcast %cst_12 : f32 to vector<8x1xf32>
    %20 = arith.addf %17, %19 : vector<8x1xf32>
    %21 = math.rsqrt %20 : vector<8x1xf32>
    %22 = arith.mulf %18, %21 : vector<8x1xf32>
    %c0_13 = arith.constant 0 : index
    %c0_14 = arith.constant 0 : index
    %23 = vector.load %arg5[%c0_13, %c0_14] : memref<8x1xf32, #tpu.memory_space<vmem>>, vector<8x1xf32>
    %24 = arith.mulf %13, %22 : vector<8x1xf32>
    %25 = arith.subf %23, %24 : vector<8x1xf32>
    %26 = vector.broadcast %22 : vector<8x1xf32> to vector<8x512xf32>
    %27 = arith.mulf %6, %26 : vector<8x512xf32>
    %28 = vector.broadcast %25 : vector<8x1xf32> to vector<8x512xf32>
    %29 = arith.addf %27, %28 : vector<8x512xf32>
    %cst_15 = arith.constant 0.000000e+00 : f32
    %30 = vector.broadcast %cst_15 : f32 to vector<8x512xf32>
    %31 = arith.maximumf %29, %30 : vector<8x512xf32>
    %c0_16 = arith.constant 0 : index
    %c0_17 = arith.constant 0 : index
    %32 = vector.load %arg6[%c0_16, %c0_17] : memref<8x9xf32, #tpu.memory_space<vmem>>, vector<8x9xf32>
    %c0_18 = arith.constant 0 : index
    %c0_19 = arith.constant 0 : index
    %33 = vector.load %arg1[%c0_18, %c0_19] : memref<9x512xf32, #tpu.memory_space<vmem>>, vector<9x512xf32>
    %cst_20 = arith.constant 0.000000e+00 : f32
    %34 = vector.broadcast %cst_20 : f32 to vector<8x512xf32>
    %c17_i32 = arith.constant 17 : i32
    %35 = tpu.dynamic_rotate %31 by %c17_i32 dim 1 : vector<8x512xf32>, i32 -> vector<8x512xf32>
    %36 = vector.extract_strided_slice %33 {offsets = [0, 0], sizes = [1, 512], strides = [1, 1]} : vector<9x512xf32> to vector<1x512xf32>
    %37 = vector.broadcast %36 : vector<1x512xf32> to vector<8x512xf32>
    %38 = arith.mulf %35, %37 : vector<8x512xf32>
    %39 = vector.extract_strided_slice %32 {offsets = [0, 0], sizes = [8, 1], strides = [1, 1]} : vector<8x9xf32> to vector<8x1xf32>
    %40 = vector.broadcast %39 : vector<8x1xf32> to vector<8x512xf32>
    %41 = arith.mulf %38, %40 : vector<8x512xf32>
    %42 = arith.addf %34, %41 : vector<8x512xf32>
    %c16_i32 = arith.constant 16 : i32
    %43 = tpu.dynamic_rotate %31 by %c16_i32 dim 1 : vector<8x512xf32>, i32 -> vector<8x512xf32>
    %44 = vector.extract_strided_slice %33 {offsets = [1, 0], sizes = [1, 512], strides = [1, 1]} : vector<9x512xf32> to vector<1x512xf32>
    %45 = vector.broadcast %44 : vector<1x512xf32> to vector<8x512xf32>
    %46 = arith.mulf %43, %45 : vector<8x512xf32>
    %47 = vector.extract_strided_slice %32 {offsets = [0, 1], sizes = [8, 1], strides = [1, 1]} : vector<8x9xf32> to vector<8x1xf32>
    %48 = vector.broadcast %47 : vector<8x1xf32> to vector<8x512xf32>
    %49 = arith.mulf %46, %48 : vector<8x512xf32>
    %50 = arith.addf %42, %49 : vector<8x512xf32>
    %c15_i32 = arith.constant 15 : i32
    %51 = tpu.dynamic_rotate %31 by %c15_i32 dim 1 : vector<8x512xf32>, i32 -> vector<8x512xf32>
    %52 = vector.extract_strided_slice %33 {offsets = [2, 0], sizes = [1, 512], strides = [1, 1]} : vector<9x512xf32> to vector<1x512xf32>
    %53 = vector.broadcast %52 : vector<1x512xf32> to vector<8x512xf32>
    %54 = arith.mulf %51, %53 : vector<8x512xf32>
    %55 = vector.extract_strided_slice %32 {offsets = [0, 2], sizes = [8, 1], strides = [1, 1]} : vector<8x9xf32> to vector<8x1xf32>
    %56 = vector.broadcast %55 : vector<8x1xf32> to vector<8x512xf32>
    %57 = arith.mulf %54, %56 : vector<8x512xf32>
    %58 = arith.addf %50, %57 : vector<8x512xf32>
    %c1_i32 = arith.constant 1 : i32
    %59 = tpu.dynamic_rotate %31 by %c1_i32 dim 1 : vector<8x512xf32>, i32 -> vector<8x512xf32>
    %60 = vector.extract_strided_slice %33 {offsets = [3, 0], sizes = [1, 512], strides = [1, 1]} : vector<9x512xf32> to vector<1x512xf32>
    %61 = vector.broadcast %60 : vector<1x512xf32> to vector<8x512xf32>
    %62 = arith.mulf %59, %61 : vector<8x512xf32>
    %63 = vector.extract_strided_slice %32 {offsets = [0, 3], sizes = [8, 1], strides = [1, 1]} : vector<8x9xf32> to vector<8x1xf32>
    %64 = vector.broadcast %63 : vector<8x1xf32> to vector<8x512xf32>
    %65 = arith.mulf %62, %64 : vector<8x512xf32>
    %66 = arith.addf %58, %65 : vector<8x512xf32>
    %67 = vector.extract_strided_slice %33 {offsets = [4, 0], sizes = [1, 512], strides = [1, 1]} : vector<9x512xf32> to vector<1x512xf32>
    %68 = vector.broadcast %67 : vector<1x512xf32> to vector<8x512xf32>
    %69 = arith.mulf %31, %68 : vector<8x512xf32>
    %70 = vector.extract_strided_slice %32 {offsets = [0, 4], sizes = [8, 1], strides = [1, 1]} : vector<8x9xf32> to vector<8x1xf32>
    %71 = vector.broadcast %70 : vector<8x1xf32> to vector<8x512xf32>
    %72 = arith.mulf %69, %71 : vector<8x512xf32>
    %73 = arith.addf %66, %72 : vector<8x512xf32>
    %c511_i32 = arith.constant 511 : i32
    %74 = tpu.dynamic_rotate %31 by %c511_i32 dim 1 : vector<8x512xf32>, i32 -> vector<8x512xf32>
    %75 = vector.extract_strided_slice %33 {offsets = [5, 0], sizes = [1, 512], strides = [1, 1]} : vector<9x512xf32> to vector<1x512xf32>
    %76 = vector.broadcast %75 : vector<1x512xf32> to vector<8x512xf32>
    %77 = arith.mulf %74, %76 : vector<8x512xf32>
    %78 = vector.extract_strided_slice %32 {offsets = [0, 5], sizes = [8, 1], strides = [1, 1]} : vector<8x9xf32> to vector<8x1xf32>
    %79 = vector.broadcast %78 : vector<8x1xf32> to vector<8x512xf32>
    %80 = arith.mulf %77, %79 : vector<8x512xf32>
    %81 = arith.addf %73, %80 : vector<8x512xf32>
    %c497_i32 = arith.constant 497 : i32
    %82 = tpu.dynamic_rotate %31 by %c497_i32 dim 1 : vector<8x512xf32>, i32 -> vector<8x512xf32>
    %83 = vector.extract_strided_slice %33 {offsets = [6, 0], sizes = [1, 512], strides = [1, 1]} : vector<9x512xf32> to vector<1x512xf32>
    %84 = vector.broadcast %83 : vector<1x512xf32> to vector<8x512xf32>
    %85 = arith.mulf %82, %84 : vector<8x512xf32>
    %86 = vector.extract_strided_slice %32 {offsets = [0, 6], sizes = [8, 1], strides = [1, 1]} : vector<8x9xf32> to vector<8x1xf32>
    %87 = vector.broadcast %86 : vector<8x1xf32> to vector<8x512xf32>
    %88 = arith.mulf %85, %87 : vector<8x512xf32>
    %89 = arith.addf %81, %88 : vector<8x512xf32>
    %c496_i32 = arith.constant 496 : i32
    %90 = tpu.dynamic_rotate %31 by %c496_i32 dim 1 : vector<8x512xf32>, i32 -> vector<8x512xf32>
    %91 = vector.extract_strided_slice %33 {offsets = [7, 0], sizes = [1, 512], strides = [1, 1]} : vector<9x512xf32> to vector<1x512xf32>
    %92 = vector.broadcast %91 : vector<1x512xf32> to vector<8x512xf32>
    %93 = arith.mulf %90, %92 : vector<8x512xf32>
    %94 = vector.extract_strided_slice %32 {offsets = [0, 7], sizes = [8, 1], strides = [1, 1]} : vector<8x9xf32> to vector<8x1xf32>
    %95 = vector.broadcast %94 : vector<8x1xf32> to vector<8x512xf32>
    %96 = arith.mulf %93, %95 : vector<8x512xf32>
    %97 = arith.addf %89, %96 : vector<8x512xf32>
    %c495_i32 = arith.constant 495 : i32
    %98 = tpu.dynamic_rotate %31 by %c495_i32 dim 1 : vector<8x512xf32>, i32 -> vector<8x512xf32>
    %99 = vector.extract_strided_slice %33 {offsets = [8, 0], sizes = [1, 512], strides = [1, 1]} : vector<9x512xf32> to vector<1x512xf32>
    %100 = vector.broadcast %99 : vector<1x512xf32> to vector<8x512xf32>
    %101 = arith.mulf %98, %100 : vector<8x512xf32>
    %102 = vector.extract_strided_slice %32 {offsets = [0, 8], sizes = [8, 1], strides = [1, 1]} : vector<8x9xf32> to vector<8x1xf32>
    %103 = vector.broadcast %102 : vector<8x1xf32> to vector<8x512xf32>
    %104 = arith.mulf %101, %103 : vector<8x512xf32>
    %105 = arith.addf %97, %104 : vector<8x512xf32>
    %cst_21 = arith.constant dense<0.000000e+00> : vector<8xf32>
    %106 = vector.multi_reduction <add>, %105, %cst_21 [1] : vector<8x512xf32> to vector<8xf32>
    %107 = vector.shape_cast %106 : vector<8xf32> to vector<8x1xf32>
    %108 = arith.mulf %105, %105 : vector<8x512xf32>
    %cst_22 = arith.constant dense<0.000000e+00> : vector<8xf32>
    %109 = vector.multi_reduction <add>, %108, %cst_22 [1] : vector<8x512xf32> to vector<8xf32>
    %110 = vector.shape_cast %109 : vector<8xf32> to vector<8x1xf32>
    %cst_23 = arith.constant 0.001953125 : f32
    %111 = vector.broadcast %cst_23 : f32 to vector<8x1xf32>
    %112 = arith.mulf %107, %111 : vector<8x1xf32>
    %cst_24 = arith.constant 0.001953125 : f32
    %113 = vector.broadcast %cst_24 : f32 to vector<8x1xf32>
    %114 = arith.mulf %110, %113 : vector<8x1xf32>
    %115 = arith.mulf %112, %112 : vector<8x1xf32>
    %116 = arith.subf %114, %115 : vector<8x1xf32>
    %c0_25 = arith.constant 0 : index
    %c0_26 = arith.constant 0 : index
    %117 = vector.load %arg7[%c0_25, %c0_26] : memref<8x1xf32, #tpu.memory_space<vmem>>, vector<8x1xf32>
    %cst_27 = arith.constant 9.99999974E-6 : f32
    %118 = vector.broadcast %cst_27 : f32 to vector<8x1xf32>
    %119 = arith.addf %116, %118 : vector<8x1xf32>
    %120 = math.rsqrt %119 : vector<8x1xf32>
    %121 = arith.mulf %117, %120 : vector<8x1xf32>
    %c0_28 = arith.constant 0 : index
    %c0_29 = arith.constant 0 : index
    %122 = vector.load %arg8[%c0_28, %c0_29] : memref<8x1xf32, #tpu.memory_space<vmem>>, vector<8x1xf32>
    %123 = arith.mulf %112, %121 : vector<8x1xf32>
    %124 = arith.subf %122, %123 : vector<8x1xf32>
    %125 = vector.broadcast %121 : vector<8x1xf32> to vector<8x512xf32>
    %126 = arith.mulf %105, %125 : vector<8x512xf32>
    %127 = vector.broadcast %124 : vector<8x1xf32> to vector<8x512xf32>
    %128 = arith.addf %126, %127 : vector<8x512xf32>
    %cst_30 = arith.constant 0.000000e+00 : f32
    %129 = vector.broadcast %cst_30 : f32 to vector<8x512xf32>
    %130 = arith.maximumf %128, %129 : vector<8x512xf32>
    %131 = vector.extract_strided_slice %130 {offsets = [0, 0], sizes = [8, 256], strides = [1, 1]} : vector<8x512xf32> to vector<8x256xf32>
    %cst_31 = arith.constant dense<0.000000e+00> : vector<8xf32>
    %132 = vector.multi_reduction <add>, %131, %cst_31 [1] : vector<8x256xf32> to vector<8xf32>
    %133 = vector.shape_cast %132 : vector<8xf32> to vector<8x1xf32>
    %cst_32 = arith.constant 3.906250e-03 : f32
    %134 = vector.broadcast %cst_32 : f32 to vector<8x1xf32>
    %135 = arith.mulf %133, %134 : vector<8x1xf32>
    %136 = vector.extract_strided_slice %130 {offsets = [0, 256], sizes = [8, 256], strides = [1, 1]} : vector<8x512xf32> to vector<8x256xf32>
    %cst_33 = arith.constant dense<0.000000e+00> : vector<8xf32>
    %137 = vector.multi_reduction <add>, %136, %cst_33 [1] : vector<8x256xf32> to vector<8xf32>
    %138 = vector.shape_cast %137 : vector<8xf32> to vector<8x1xf32>
    %cst_34 = arith.constant 3.906250e-03 : f32
    %139 = vector.broadcast %cst_34 : f32 to vector<8x1xf32>
    %140 = arith.mulf %138, %139 : vector<8x1xf32>
    %141 = tpu.concatenate %135, %140 in 1 : vector<8x1xf32>, vector<8x1xf32> -> vector<8x2xf32>
    %c0_35 = arith.constant 0 : index
    %c0_36 = arith.constant 0 : index
    %142 = vector.load %arg9[%c0_35, %c0_36] : memref<2x8xf32, #tpu.memory_space<vmem>>, vector<2x8xf32>
    %cst_37 = arith.constant dense<0.000000e+00> : vector<2x2xf32>
    %143 = tpu.matmul %142, %141, %cst_37 {dimension_numbers = #tpu.dot_dimension_numbers<[1], [0], [0], [1], [0, 0, 1, 1], [], []>} : vector<2x8xf32>, vector<8x2xf32>, vector<2x2xf32> -> vector<2x2xf32>
    %c0_38 = arith.constant 0 : index
    %c0_39 = arith.constant 0 : index
    %144 = vector.load %arg10[%c0_38, %c0_39] : memref<2x1xf32, #tpu.memory_space<vmem>>, vector<2x1xf32>
    %145 = vector.broadcast %144 : vector<2x1xf32> to vector<2x2xf32>
    %146 = arith.addf %143, %145 : vector<2x2xf32>
    %cst_40 = arith.constant 0.000000e+00 : f32
    %147 = vector.broadcast %cst_40 : f32 to vector<2x2xf32>
    %148 = arith.maximumf %146, %147 : vector<2x2xf32>
    %c0_41 = arith.constant 0 : index
    %c0_42 = arith.constant 0 : index
    %149 = vector.load %arg11[%c0_41, %c0_42] : memref<8x2xf32, #tpu.memory_space<vmem>>, vector<8x2xf32>
    %cst_43 = arith.constant dense<0.000000e+00> : vector<8x2xf32>
    %150 = tpu.matmul %149, %148, %cst_43 {dimension_numbers = #tpu.dot_dimension_numbers<[1], [0], [0], [1], [0, 0, 1, 1], [], []>} : vector<8x2xf32>, vector<2x2xf32>, vector<8x2xf32> -> vector<8x2xf32>
    %c0_44 = arith.constant 0 : index
    %c0_45 = arith.constant 0 : index
    %151 = vector.load %arg12[%c0_44, %c0_45] : memref<8x1xf32, #tpu.memory_space<vmem>>, vector<8x1xf32>
    %152 = vector.broadcast %151 : vector<8x1xf32> to vector<8x2xf32>
    %153 = arith.addf %150, %152 : vector<8x2xf32>
    %154 = arith.negf %153 : vector<8x2xf32>
    %155 = math.exp %154 : vector<8x2xf32>
    %cst_46 = arith.constant 1.000000e+00 : f32
    %156 = vector.broadcast %cst_46 : f32 to vector<8x2xf32>
    %157 = arith.addf %156, %155 : vector<8x2xf32>
    %158 = arith.divf %156, %157 : vector<8x2xf32>
    %159 = vector.extract_strided_slice %158 {offsets = [0, 0], sizes = [8, 1], strides = [1, 1]} : vector<8x2xf32> to vector<8x1xf32>
    %160 = vector.shape_cast %159 : vector<8x1xf32> to vector<8x1xf32>
    %161 = vector.broadcast %160 : vector<8x1xf32> to vector<8x256xf32>
    %162 = vector.extract_strided_slice %158 {offsets = [0, 1], sizes = [8, 1], strides = [1, 1]} : vector<8x2xf32> to vector<8x1xf32>
    %163 = vector.shape_cast %162 : vector<8x1xf32> to vector<8x1xf32>
    %164 = vector.broadcast %163 : vector<8x1xf32> to vector<8x256xf32>
    %165 = tpu.concatenate %161, %164 in 1 : vector<8x256xf32>, vector<8x256xf32> -> vector<8x512xf32>
    %166 = arith.mulf %130, %165 : vector<8x512xf32>
    %c0_47 = arith.constant 0 : index
    %c0_48 = arith.constant 0 : index
    %167 = vector.load %arg13[%c0_47, %c0_48] : memref<4x8xf32, #tpu.memory_space<vmem>>, vector<4x8xf32>
    %cst_49 = arith.constant dense<0.000000e+00> : vector<4x512xf32>
    %168 = tpu.matmul %167, %166, %cst_49 {dimension_numbers = #tpu.dot_dimension_numbers<[1], [0], [0], [1], [0, 0, 1, 1], [], []>} : vector<4x8xf32>, vector<8x512xf32>, vector<4x512xf32> -> vector<4x512xf32>
    %cst_50 = arith.constant dense<0.000000e+00> : vector<4xf32>
    %169 = vector.multi_reduction <add>, %168, %cst_50 [1] : vector<4x512xf32> to vector<4xf32>
    %170 = vector.shape_cast %169 : vector<4xf32> to vector<4x1xf32>
    %171 = arith.mulf %168, %168 : vector<4x512xf32>
    %cst_51 = arith.constant dense<0.000000e+00> : vector<4xf32>
    %172 = vector.multi_reduction <add>, %171, %cst_51 [1] : vector<4x512xf32> to vector<4xf32>
    %173 = vector.shape_cast %172 : vector<4xf32> to vector<4x1xf32>
    %cst_52 = arith.constant 0.001953125 : f32
    %174 = vector.broadcast %cst_52 : f32 to vector<4x1xf32>
    %175 = arith.mulf %170, %174 : vector<4x1xf32>
    %cst_53 = arith.constant 0.001953125 : f32
    %176 = vector.broadcast %cst_53 : f32 to vector<4x1xf32>
    %177 = arith.mulf %173, %176 : vector<4x1xf32>
    %178 = arith.mulf %175, %175 : vector<4x1xf32>
    %179 = arith.subf %177, %178 : vector<4x1xf32>
    %c0_54 = arith.constant 0 : index
    %c0_55 = arith.constant 0 : index
    %180 = vector.load %arg14[%c0_54, %c0_55] : memref<4x1xf32, #tpu.memory_space<vmem>>, vector<4x1xf32>
    %cst_56 = arith.constant 9.99999974E-6 : f32
    %181 = vector.broadcast %cst_56 : f32 to vector<4x1xf32>
    %182 = arith.addf %179, %181 : vector<4x1xf32>
    %183 = math.rsqrt %182 : vector<4x1xf32>
    %184 = arith.mulf %180, %183 : vector<4x1xf32>
    %c0_57 = arith.constant 0 : index
    %c0_58 = arith.constant 0 : index
    %185 = vector.load %arg15[%c0_57, %c0_58] : memref<4x1xf32, #tpu.memory_space<vmem>>, vector<4x1xf32>
    %186 = arith.mulf %175, %184 : vector<4x1xf32>
    %187 = arith.subf %185, %186 : vector<4x1xf32>
    %188 = vector.broadcast %184 : vector<4x1xf32> to vector<4x512xf32>
    %189 = arith.mulf %168, %188 : vector<4x512xf32>
    %190 = vector.broadcast %187 : vector<4x1xf32> to vector<4x512xf32>
    %191 = arith.addf %189, %190 : vector<4x512xf32>
    %192 = arith.addf %191, %4 : vector<4x512xf32>
    %193 = vector.extract_strided_slice %192 {offsets = [0, 0], sizes = [4, 256], strides = [1, 1]} : vector<4x512xf32> to vector<4x256xf32>
    %c0_59 = arith.constant 0 : index
    %c0_60 = arith.constant 0 : index
    %c0_61 = arith.constant 0 : index
    %194 = vector.load %arg16[%c0_59, %c0_60, %c0_61] : memref<2x4x256xf32, #tpu.memory_space<vmem>>, vector<1x4x256xf32>
    %195 = vector.shape_cast %194 : vector<1x4x256xf32> to vector<4x256xf32>
    %196 = vector.shape_cast %193 : vector<4x256xf32> to vector<1x4x256xf32>
    tpu.vector_store %arg16[%c0_59, %c0_60, %c0_61], %196 {strides = array<i32>} : memref<2x4x256xf32, #tpu.memory_space<vmem>>, vector<1x4x256xf32>,
    %197 = vector.extract_strided_slice %192 {offsets = [0, 256], sizes = [4, 256], strides = [1, 1]} : vector<4x512xf32> to vector<4x256xf32>
    %c1_62 = arith.constant 1 : index
    %c0_63 = arith.constant 0 : index
    %c0_64 = arith.constant 0 : index
    %198 = vector.load %arg16[%c1_62, %c0_63, %c0_64] : memref<2x4x256xf32, #tpu.memory_space<vmem>>, vector<1x4x256xf32>
    %199 = vector.shape_cast %198 : vector<1x4x256xf32> to vector<4x256xf32>
    %200 = vector.shape_cast %197 : vector<4x256xf32> to vector<1x4x256xf32>
    tpu.vector_store %arg16[%c1_62, %c0_63, %c0_64], %200 {strides = array<i32>} : memref<2x4x256xf32, #tpu.memory_space<vmem>>, vector<1x4x256xf32>,
    return
  }
}

</mosaic_0001>

<bundles_post_ra>
// kernel: tpu_custom_call.1
= control target key start
LH: loop header
LB: loop body
LE: loop exit
PB: predicated region body
PF: predicated region fallthrough
CT: control target
= control target key end

     0   :  { %s1458_s0 = inlined_call_operand.vmem [shape: f32[2,4,256], index: 0, kind: input, shape index: {}]   ;;  %s1459_s1 = inlined_call_operand.vmem [shape: f32[9,512], index: 1, kind: input, shape index: {}]   ;;  %s1460_s2 = inlined_call_operand.<no memory space> [shape: f32[1,1], index: 2, kind: input, shape index: {}]   ;;  %s1461_s3 = inlined_call_operand.vmem [shape: f32[8,4], index: 3, kind: input, shape index: {}]   ;;  %s1462_s4 = inlined_call_operand.vmem [shape: f32[8,1], index: 4, kind: input, shape index: {}]   ;;  %s1463_s5 = inlined_call_operand.vmem [shape: f32[8,1], index: 5, kind: input, shape index: {}]   ;;  %s1464_s6 = inlined_call_operand.hbm [shape: f32[8,9], index: 6, kind: input, shape index: {}]   ;;  %s1465_s7 = inlined_call_operand.vmem [shape: f32[8,1], index: 7, kind: input, shape index: {}]   ;;  %s1466_s8 = inlined_call_operand.vmem [shape: f32[8,1], index: 8, kind: input, shape index: {}]   ;;  %s1467_s9 = inlined_call_operand.vmem [shape: f32[2,8], index: 9, kind: input, shape index: {}]   ;;  %s1468_s10 = inlined_call_operand.vmem [shape: f32[2,1], index: 10, kind: input, shape index: {}]   ;;  %s1469_s11 = inlined_call_operand.vmem [shape: f32[8,2], index: 11, kind: input, shape index: {}]   ;;  %s1470_s12 = inlined_call_operand.vmem [shape: f32[8,1], index: 12, kind: input, shape index: {}]   ;;  %s1471_s13 = inlined_call_operand.vmem [shape: f32[4,8], index: 13, kind: input, shape index: {}]   ;;  %s1472_s14 = inlined_call_operand.vmem [shape: f32[4,1], index: 14, kind: input, shape index: {}]   ;;  %s1473_s15 = inlined_call_operand.vmem [shape: f32[4,1], index: 15, kind: input, shape index: {}]   ;;  %s1474_s16 = inlined_call_operand.hbm [shape: f32[2,4,256], index: 16, kind: output, shape index: {}]  }
   0x1   :  { %1476 = sst [smem:[#allocation9_spill]] %s1458_s0 }
   0x2   :  { %23 = vsyncpa [#allocation4], 0 }
   0x3   :  { %24 = vsyncpa [#allocation5], 0  ;;  %s42_s21 = sshll.u32 %s1464_s6, 4  ;;  %s996_s22 = smov [#allocation3]   ;;  %s43_s21 = int_to_ptr.hbm [resolvable:$true] %s42_s21 }
   0x4   :  { %s44_s23 = sshll.u32 %s996_s22, 4  ;;  %s45_s23 = int_to_ptr.vmem [resolvable:$true] %s44_s23 }
   0x5   :  { %47 = dma.hbm_to_vmem [thread:$0]  %s43_s21, 128, %s45_s23, [#allocation4]  }
   0x6   :  { %992 = dma.done.wait [#allocation4], 128  }
   0x7   :  { %993 = vsyncadd [#allocation4], 4294967168  ;;  %s1477_s26 = sld [smem:[#allocation9_spill]]  ;;  %vm90_vm0 = vcmask 1043456   ;;  %v85_v4 = vld [vmem:[%s1461_s3] sm:$0xff]  ;;  %vm86_vm1 = vcmask 31744  }
   0x8   :  { %v997_v21 = vmov 4   ;;  %v1139_v22 = vld [vmem:[#allocation3] sm:$0xff]  ;;  %v998_v23 = vmov 0   ;;  %v999_v30 = vmov 1   ;;  %v1000_v33 = vmov 2   ;;  %v197_v38 = vld [vmem:[%s1462_s4] sm:$0xff] }
   0x9   :  { %918 = vset.pattern.permute.xlu1 %v997_v21  ;;  %914 = vset.pattern.permute.xlu2 %v998_v23  ;;  %v210_v43 = vld [vmem:[%s1463_s5] sm:$0xff]  ;;  %v1001_v45 = vmov 5   ;;  %v1002_v46 = vmov 3   ;;  %v1003_v47 = vmov 6   ;;  %s1004_s4 = smov 17   ;;  %s1005_s5 = smov 16  }
   0xa   :  { %388 = vperm.xlu1 %918, %v1139_v22   ;;  %269 = vperm.xlu2 %914, %v1139_v22   ;;  %s1006_s18 = smov 15   ;;  %s1007_s19 = smov 127   ;;  %v1010_v63 = vmov 7  }
   0xb   :  { %915 = vset.pattern.permute.xlu0 %v999_v30  ;;  %s1008_s20 = smov 113   ;;  %s1009_s2 = smov 1  }
   0xc   :  { %s1011_s21 = smov 112   ;;  %s1013_s22 = smov 111  }
   0xd   :  { %v70_v0 = vld [vmem:[%s1477_s26] sm:$0xff]  ;;  %v876_v1 = vld [vmem:[%s1477_s26 + $0x8] sm:$0xff]  ;;  %s863_s3 = sshll.u32 %s1474_s16, 4  ;;  %s1015_s0 = smov 128   ;;  %s864_s3 = int_to_ptr.hbm [resolvable:$true] %s863_s3 }
   0xe   :  { %74 = vst [vmem:[#allocation1] ss:$2 sm:$0xff] %v70_v0  ;;  %s1016_s30 = smov 8  }
  0x12   :  { %921 = vset.pattern.permute.xlu1 %v998_v23  ;;  %917 = vset.pattern.permute.xlu2 %v1002_v46 }
  0x13   :  { %368 = vperm.xlu2 %917, %v1139_v22  }
  0x15   :  { %v1111_v2 = vld.sshfl [vmem:[#allocation1] sm:$0xff pattern:$0x75316420]  ;;  %v1113_v3 = vld.sshfl [vmem:[#allocation1 + $0x8] sm:$0xff pattern:$0x75316420] }
  0x16   :  { %80 = vst [vmem:[#allocation1] ss:$2 sm:$0xff] %v876_v1  ;;  %877 = vmatpush.msk.msra.mxu0 %vm90_vm0, %v1111_v2  ;;  %879 = vmatpush.msk.msra.mxu1 %vm90_vm0, %v1113_v3 }
  0x17   :  { %878 = vmatmul.msk.f32.vlgmr.msra.gmra.mxu0 %vm86_vm1, %v85_v4  ;;  %880 = vmatmul.msk.f32.vlgmr.msra.gmra.mxu1 %vm86_vm1, %v85_v4 }
  0x1d   :  { %v81_v5 = vld.sshfl [vmem:[#allocation1] sm:$0xff pattern:$0x75316420]  ;;  %v82_v6 = vld.sshfl [vmem:[#allocation1 + $0x8] sm:$0xff pattern:$0x75316420] }
  0x1e   :  { %881 = vmatpush.msk.msra.mxu2 %vm90_vm0, %v81_v5  ;;  %883 = vmatpush.msk.msra.mxu3 %vm90_vm0, %v82_v6  ;;  %v252_v6 = vlaneseq }
  0x1f   :  { %882 = vmatmul.msk.f32.vlgmr.msra.gmra.mxu2 %vm86_vm1, %v85_v4  ;;  %884 = vmatmul.msk.f32.vlgmr.msra.gmra.mxu3 %vm86_vm1, %v85_v4  ;;  %vm595_vm1 = vcmask 7168  }
  0x64   :  { %v1194_v0 = vpop.permute.xlu2 %269 }
  0x6d   :  { %v1202_v4 = vpop.permute.xlu2 %368 }
  0x7c   :  { %v1157_v48 = vpop.permute.xlu1 %388 }
  0x94   :  { %v1124_v7 = vpop.f32.mrf.mxu0  ;;  %v1126_v8 = vpop.f32.mrf.mxu1 }
  0x95   :  { %v179_v9 = vadd.f32 %v1126_v8, %v1124_v7  ;;  %v184_v10 = vmul.f32 %v1124_v7, %v1124_v7  ;;  %v185_v11 = vmul.f32 %v1126_v8, %v1126_v8 }
  0x97   :  { %v188_v17 = vadd.f32 %v185_v11, %v184_v10 }
  0xa2   :  { %v1134_v12 = vpop.f32.mrf.mxu2  ;;  %v176_v13 = vpop.f32.mrf.mxu3 }
  0xa3   :  { %v180_v14 = vadd.f32 %v179_v9, %v1134_v12  ;;  %v186_v15 = vmul.f32 %v1134_v12, %v1134_v12  ;;  %v187_v18 = vmul.f32 %v176_v13, %v176_v13  ;;  %v1208_v9 = vand.u32 127, %v252_v6 }
  0xa5   :  { %v181_v16 = vadd.f32 %v180_v14, %v176_v13  ;;  %v189_v19 = vadd.f32 %v188_v17, %v186_v15  ;;  %vm254_vm5 = vcmp.lt.s32.totalorder %v1208_v9, 17  ;;  %v1224_v15 = vld [vmem:[%s1459_s1 + $0x8] sm:$0xff]  ;;  %vm288_vm6 = vcmp.lt.s32.totalorder %v1208_v9, 16 }
  0xa6   :  { %v294_v17 = vperm.slane %v1224_v15, 1  ;;  %vm321_vm7 = vcmp.lt.s32.totalorder %v1208_v9, 15  ;;  %vm354_vm8 = vcmp.lt.s32.totalorder %v1208_v9, 1  ;;  %vm407_vm9 = vcmp.lt.s32.totalorder %v1208_v9, 127 }
  0xa7   :  { %182 = vadd.xlane.f32.xlu0 %v181_v16  ;;  %v190_v20 = vadd.f32 %v189_v19, %v187_v18  ;;  %v260_v16 = vperm.slane %v1224_v15, 0  ;;  %vm440_vm10 = vcmp.lt.s32.totalorder %v1208_v9, 113  ;;  %vm473_vm11 = vcmp.lt.s32.totalorder %v1208_v9, 112 }
  0xa8   :  { %vm506_vm12 = vcmp.lt.s32.totalorder %v1208_v9, 111 }
  0xaf   :  { %191 = vadd.xlane.f32.xlu0 %v190_v20 }
  0xc3   :  { %302 = vperm.xlu0 %915, %v1139_v22  }
  0xcb   :  { %916 = vset.pattern.permute.xlu0 %v1000_v33 }
  0xcc   :  { %335 = vperm.xlu0 %916, %v1139_v22  }
  0xd4   :  { %919 = vset.pattern.permute.xlu0 %v1001_v45 }
  0xd5   :  { %421 = vperm.xlu0 %919, %v1139_v22  }
  0xdd   :  { %920 = vset.pattern.permute.xlu0 %v1003_v47 }
  0xde   :  { %454 = vperm.xlu0 %920, %v1139_v22  }
  0xe6   :  { %922 = vset.pattern.permute.xlu0 %v1010_v63 }
 0x11a   :  { %v183_v24 = vpop.xlane.xlu0 %182 }
 0x11b   :  { %v193_v25 = vmul.f32 0.001953125, %v183_v24 }
 0x11d   :  { %v195_v27 = vmul.f32 %v193_v25, %v193_v25 }
 0x122   :  { %v192_v26 = vpop.xlane.xlu0 %191 }
 0x123   :  { %v194_v28 = vmul.f32 0.001953125, %v192_v26 }
 0x125   :  { %v196_v29 = vsub.f32 %v194_v28, %v195_v27  ;;  %v1237_v27 = vld [vmem:[%s1459_s1] sm:$0xff] }
 0x126   :  { %v293_v33 = vperm.slane %v1237_v27, 1 }
 0x127   :  { %v198_v31 = vadd.f32 1e-05, %v196_v29  ;;  %v259_v29 = vperm.slane %v1237_v27, 0 }
 0x129   :  { %932 = vrsqrt.f32 %v198_v31  ;;  %vm205_vm3 = vweird.f32 %v198_v31 }
 0x12f   :  { %v933_v32 = vpop.eup %932 }
 0x130   :  { %v200_v34 = vmul.f32 %v933_v32, %v198_v31  ;;  %vm206_vm2 = vweird.f32 %v933_v32 }
 0x131   :  { %vm207_vm4 = vmor %vm205_vm3, %vm206_vm2  ;;  %vm604_vm2 = vcmask 64512   ;;  %vm640_vm3 = vcmask 1041408  }
 0x132   :  { %v201_v35 = vmul.f32 %v933_v32, %v200_v34  ;;  %v327_v34 = vperm.slane %v1224_v15, 2 }
 0x134   :  { %v202_v36 = vmul.f32 0.5, %v201_v35 }
 0x135   :  { %v1198_v1 = vpop.permute.xlu0 %302 }
 0x136   :  { %v203_v37 = vsub.f32 1.5, %v202_v36 }
 0x138   :  { %v204_v39 = vmul.f32 %v933_v32, %v203_v37 }
 0x13a   :  { %v208_v40 = vsel %vm207_vm4, %v933_v32, %v204_v39  ;;  %vm636_vm4 = vcmask 15360  }
 0x13b   :  { %v209_v41 = vmul.f32 %v208_v40, %v197_v38 }
 0x13d   :  { %215 = vperm.xlu1 %921, %v209_v41   ;;  %v211_v42 = vmul.f32 %v209_v41, %v193_v25 }
 0x13e   :  { %v1204_v5 = vpop.permute.xlu0 %335 }
 0x13f   :  { %v212_v44 = vsub.f32 %v210_v43, %v211_v42  ;;  %v1255_v42 = vld [vmem:[%s1459_s1 + $0x10] sm:$0xff]  ;;  %v1260_v43 = vld [vmem:[%s1459_s1 + $0x18] sm:$0xff] }
 0x140   :  { %v261_v45 = vperm.slane %v1255_v42, 0  ;;  %v262_v46 = vperm.slane %v1260_v43, 0 }
 0x145   :  { %224 = vperm.xlu1 %921, %v212_v44  }
 0x147   :  { %v1210_v10 = vpop.permute.xlu0 %421 }
 0x1af   :  { %v216_v49 = vpop.permute.xlu1 %215 }
 0x1b0   :  { %v218_v50 = vmul.f32 %v216_v49, %v1124_v7  ;;  %v221_v51 = vmul.f32 %v216_v49, %v176_v13  ;;  %v219_v57 = vmul.f32 %v216_v49, %v1126_v8  ;;  %v220_v60 = vmul.f32 %v216_v49, %v1134_v12  ;;  %v1218_v13 = vpop.permute.xlu0 %454 }
 0x1b1   :  { %v1012_v7 = vmov 8  }
 0x1b2   :  { %923 = vset.pattern.permute.xlu2 %v1012_v7 }
 0x1b7   :  { %v225_v52 = vpop.permute.xlu1 %224 }
 0x1b8   :  { %v227_v53 = vadd.f32 %v225_v52, %v218_v50  ;;  %v230_v54 = vadd.f32 %v225_v52, %v221_v51  ;;  %v228_v58 = vadd.f32 %v225_v52, %v219_v57  ;;  %v229_v61 = vadd.f32 %v225_v52, %v220_v60 }
 0x1ba   :  { %v1160_v55 = vmax.f32 %v227_v53, 0.0  ;;  %v1162_v56 = vmax.f32 %v230_v54, 0.0  ;;  %v1168_v59 = vmax.f32 %v228_v58, 0.0  ;;  %v1174_v62 = vmax.f32 %v229_v61, 0.0 }
 0x1bb   :  { %v295_v53 = vperm.slane %v1255_v42, 1  ;;  %v296_v54 = vperm.slane %v1260_v43, 1 }
 0x1bc   :  { %250 = vrot.lane.b32.xlu0 %v1162_v56, %s1004_s4  ;;  %280 = vrot.lane.b32.xlu1 %v1160_v55, %s1005_s5 }
 0x1bd   :  { %244 = vrot.lane.b32.xlu2 %v1160_v55, %s1004_s4 }
 0x1c4   :  { %315 = vrot.lane.b32.xlu0 %v1168_v59, %s1006_s18  ;;  %286 = vrot.lane.b32.xlu1 %v1162_v56, %s1005_s5 }
 0x1c5   :  { %246 = vrot.lane.b32.xlu2 %v1168_v59, %s1004_s4 }
 0x1cc   :  { %403 = vrot.lane.b32.xlu0 %v1174_v62, %s1007_s19  ;;  %284 = vrot.lane.b32.xlu1 %v1174_v62, %s1005_s5 }
 0x1cd   :  { %282 = vrot.lane.b32.xlu2 %v1168_v59, %s1005_s5 }
 0x1d4   :  { %432 = vrot.lane.b32.xlu0 %v1160_v55, %s1008_s20  ;;  %319 = vrot.lane.b32.xlu1 %v1162_v56, %s1006_s18 }
 0x1d5   :  { %248 = vrot.lane.b32.xlu2 %v1174_v62, %s1004_s4 }
 0x1dc   :  { %317 = vrot.lane.b32.xlu1 %v1174_v62, %s1006_s18  ;;  %487 = vperm.xlu0 %922, %v1139_v22  }
 0x1dd   :  { %313 = vrot.lane.b32.xlu2 %v1160_v55, %s1006_s18 }
 0x1e4   :  { %348 = vrot.lane.b32.xlu1 %v1168_v59, %s1009_s2  ;;  %924 = vset.pattern.permute.xlu0 %v998_v23 }
 0x1e5   :  { %346 = vrot.lane.b32.xlu2 %v1160_v55, %s1009_s2 }
 0x1ec   :  { %350 = vrot.lane.b32.xlu1 %v1174_v62, %s1009_s2 }
 0x1ed   :  { %352 = vrot.lane.b32.xlu2 %v1162_v56, %s1009_s2 }
 0x1f4   :  { %399 = vrot.lane.b32.xlu1 %v1160_v55, %s1007_s19 }
 0x1f5   :  { %401 = vrot.lane.b32.xlu2 %v1168_v59, %s1007_s19 }
 0x1fc   :  { %434 = vrot.lane.b32.xlu1 %v1168_v59, %s1008_s20 }
 0x1fd   :  { %405 = vrot.lane.b32.xlu2 %v1162_v56, %s1007_s19 }
 0x204   :  { %438 = vrot.lane.b32.xlu1 %v1162_v56, %s1008_s20 }
 0x205   :  { %436 = vrot.lane.b32.xlu2 %v1174_v62, %s1008_s20 }
 0x20c   :  { %467 = vrot.lane.b32.xlu1 %v1168_v59, %s1011_s21 }
 0x20d   :  { %465 = vrot.lane.b32.xlu2 %v1160_v55, %s1011_s21 }
 0x214   :  { %471 = vrot.lane.b32.xlu1 %v1162_v56, %s1011_s21 }
 0x215   :  { %469 = vrot.lane.b32.xlu2 %v1174_v62, %s1011_s21 }
 0x217   :  { %v245_v8 = vpop.permute.xlu2 %244 }
 0x21c   :  { %500 = vrot.lane.b32.xlu1 %v1168_v59, %s1013_s22 }
 0x21d   :  { %498 = vrot.lane.b32.xlu2 %v1160_v55, %s1013_s22 }
 0x21f   :  { %v247_v11 = vpop.permute.xlu2 %246 }
 0x220   :  { %v257_v12 = vsel %vm254_vm5, %v245_v8, %v247_v11 }
 0x221   :  { %v264_v18 = vmul.f32 %v260_v16, %v257_v12 }
 0x223   :  { %v273_v28 = vmul.f32 %v1194_v0, %v264_v18 }
 0x224   :  { %504 = vrot.lane.b32.xlu1 %v1162_v56, %s1013_s22 }
 0x225   :  { %502 = vrot.lane.b32.xlu2 %v1174_v62, %s1013_s22 }
 0x227   :  { %v283_v14 = vpop.permute.xlu2 %282 }
 0x22d   :  { %520 = vperm.xlu2 %923, %v1139_v22  }
 0x22e   :  { %v281_v19 = vpop.permute.xlu1 %280  ;;  %v251_v20 = vpop.permute.xlu0 %250 }
 0x22f   :  { %v291_v21 = vsel %vm288_vm6, %v281_v19, %v283_v14  ;;  %v249_v24 = vpop.permute.xlu2 %248  ;;  %v258_v31 = vsel %vm254_vm5, %v251_v20, %v245_v8 }
 0x230   :  { %v298_v25 = vmul.f32 %v294_v17, %v291_v21  ;;  %v256_v26 = vsel %vm254_vm5, %v247_v11, %v249_v24  ;;  %v263_v35 = vmul.f32 %v259_v29, %v258_v31  ;;  %v255_v50 = vsel %vm254_vm5, %v249_v24, %v251_v20 }
 0x231   :  { %v265_v58 = vmul.f32 %v261_v45, %v256_v26  ;;  %v266_v60 = vmul.f32 %v262_v46, %v255_v50  ;;  %v326_v21 = vperm.slane %v1237_v27, 2  ;;  %v359_v24 = vperm.slane %v1237_v27, 3 }
 0x232   :  { %v306_v22 = vmul.f32 %v1198_v1, %v298_v25  ;;  %v272_v47 = vmul.f32 %v1194_v0, %v263_v35  ;;  %v379_v25 = vperm.slane %v1237_v27, 4 }
 0x233   :  { %v274_v12 = vmul.f32 %v1194_v0, %v265_v58  ;;  %v275_v16 = vmul.f32 %v1194_v0, %v266_v60 }
 0x234   :  { %v310_v32 = vadd.f32 %v306_v22, %v273_v28  ;;  %v383_v31 = vmul.f32 %v379_v25, %v1160_v55  ;;  %v360_v55 = vperm.slane %v1224_v15, 3 }
 0x235   :  { %925 = vset.pattern.permute.xlu2 %v998_v23 }
 0x236   :  { %v287_v36 = vpop.permute.xlu1 %286  ;;  %v316_v37 = vpop.permute.xlu0 %315 }
 0x237   :  { %v292_v38 = vsel %vm288_vm6, %v287_v36, %v281_v19  ;;  %v314_v39 = vpop.permute.xlu2 %313 }
 0x238   :  { %v297_v40 = vmul.f32 %v293_v33, %v292_v38  ;;  %v324_v41 = vsel %vm321_vm7, %v314_v39, %v316_v37  ;;  %v391_v38 = vmul.f32 %v1157_v48, %v383_v31 }
 0x239   :  { %v331_v44 = vmul.f32 %v327_v34, %v324_v41  ;;  %v329_v34 = vperm.slane %v1260_v43, 2 }
 0x23a   :  { %v305_v49 = vmul.f32 %v1198_v1, %v297_v40 }
 0x23b   :  { %v339_v51 = vmul.f32 %v1204_v5, %v331_v44 }
 0x23c   :  { %v309_v52 = vadd.f32 %v305_v49, %v272_v47  ;;  %v380_v47 = vperm.slane %v1224_v15, 4  ;;  %v328_v49 = vperm.slane %v1255_v42, 2 }
 0x23d   :  { %v343_v57 = vadd.f32 %v339_v51, %v310_v32 }
 0x23e   :  { %v285_v61 = vpop.permute.xlu1 %284 }
 0x23f   :  { %v289_v63 = vsel %vm288_vm6, %v285_v61, %v287_v36  ;;  %v290_v6 = vsel %vm288_vm6, %v283_v14, %v285_v61  ;;  %v347_v7 = vpop.permute.xlu2 %346 }
 0x240   :  { %v299_v8 = vmul.f32 %v295_v53, %v290_v6  ;;  %v300_v11 = vmul.f32 %v296_v54, %v289_v63  ;;  %v384_v54 = vmul.f32 %v380_v47, %v1168_v59  ;;  %v381_v63 = vperm.slane %v1255_v42, 4 }
 0x241   :  { %v382_v6 = vperm.slane %v1260_v43, 4  ;;  %v446_v47 = vperm.slane %v1224_v15, 6 }
 0x242   :  { %v307_v17 = vmul.f32 %v1198_v1, %v299_v8  ;;  %v308_v18 = vmul.f32 %v1198_v1, %v300_v11  ;;  %v392_v8 = vmul.f32 %v1157_v48, %v384_v54 }
 0x244   :  { %v311_v19 = vadd.f32 %v307_v17, %v274_v12  ;;  %v312_v20 = vadd.f32 %v308_v18, %v275_v16  ;;  %v362_v12 = vperm.slane %v1260_v43, 3 }
 0x246   :  { %v320_v14 = vpop.permute.xlu1 %319 }
 0x247   :  { %v325_v26 = vsel %vm321_vm7, %v320_v14, %v314_v39  ;;  %v353_v28 = vpop.permute.xlu2 %352 }
 0x248   :  { %v330_v0 = vmul.f32 %v326_v21, %v325_v26  ;;  %v358_v22 = vsel %vm354_vm8, %v353_v28, %v347_v7  ;;  %v385_v21 = vmul.f32 %v381_v63, %v1174_v62 }
 0x249   :  { %v363_v1 = vmul.f32 %v359_v24, %v358_v22 }
 0x24a   :  { %v338_v29 = vmul.f32 %v1204_v5, %v330_v0  ;;  %v393_v0 = vmul.f32 %v1157_v48, %v385_v21 }
 0x24b   :  { %v371_v33 = vmul.f32 %v1202_v4, %v363_v1 }
 0x24c   :  { %v342_v32 = vadd.f32 %v338_v29, %v309_v52 }
 0x24e   :  { %v375_v35 = vadd.f32 %v371_v33, %v342_v32  ;;  %v318_v36 = vpop.permute.xlu1 %317 }
 0x24f   :  { %v322_v39 = vsel %vm321_vm7, %v318_v36, %v320_v14  ;;  %v402_v40 = vpop.permute.xlu2 %401  ;;  %v323_v51 = vsel %vm321_vm7, %v316_v37, %v318_v36  ;;  %v361_v37 = vperm.slane %v1255_v42, 3 }
 0x250   :  { %v333_v41 = vmul.f32 %v329_v34, %v322_v39  ;;  %v1294_v44 = vadd.f32 %v391_v38, %v375_v35  ;;  %v332_v60 = vmul.f32 %v328_v49, %v323_v51  ;;  %v412_v38 = vperm.slane %v1237_v27, 5 }
 0x252   :  { %v341_v45 = vmul.f32 %v1204_v5, %v333_v41 }
 0x254   :  { %v345_v46 = vadd.f32 %v341_v45, %v312_v20 }
 0x256   :  { %v349_v50 = vpop.permute.xlu1 %348 }
 0x257   :  { %v357_v52 = vsel %vm354_vm8, %v347_v7, %v349_v50  ;;  %v1304_v53 = vpop.permute.xlu2 %405  ;;  %v340_v7 = vmul.f32 %v1204_v5, %v332_v60  ;;  %v478_v60 = vperm.slane %v1237_v27, 7 }
 0x258   :  { %v364_v58 = vmul.f32 %v360_v55, %v357_v52  ;;  %v445_v55 = vperm.slane %v1237_v27, 6  ;;  %v447_v27 = vperm.slane %v1255_v42, 6 }
 0x259   :  { %v344_v25 = vadd.f32 %v340_v7, %v311_v19  ;;  %v404_v19 = vpop.permute.xlu0 %403 }
 0x25a   :  { %v372_v61 = vmul.f32 %v1202_v4, %v364_v58  ;;  %v408_v54 = vsel %vm407_vm9, %v404_v19, %v1304_v53  ;;  %v415_v58 = vperm.slane %v1260_v43, 5 }
 0x25c   :  { %v376_v11 = vadd.f32 %v372_v61, %v343_v57  ;;  %v386_v57 = vmul.f32 %v382_v6, %v1162_v56  ;;  %v479_v61 = vperm.slane %v1224_v15, 7 }
 0x25e   :  { %v396_v16 = vadd.f32 %v392_v8, %v376_v11  ;;  %v351_v17 = vpop.permute.xlu1 %350 }
 0x25f   :  { %v355_v59 = vsel %vm354_vm8, %v351_v17, %v353_v28  ;;  %v356_v18 = vsel %vm354_vm8, %v349_v50, %v351_v17  ;;  %v437_v20 = vpop.permute.xlu2 %436  ;;  %v394_v28 = vmul.f32 %v1157_v48, %v386_v57  ;;  %v409_v48 = vsel %vm407_vm9, %v402_v40, %v404_v19 }
 0x260   :  { %v365_v24 = vmul.f32 %v361_v37, %v356_v18  ;;  %v366_v14 = vmul.f32 %v362_v12, %v355_v59  ;;  %v414_v50 = vperm.slane %v1255_v42, 5  ;;  %v448_v59 = vperm.slane %v1260_v43, 6 }
 0x261   :  { %v433_v41 = vpop.permute.xlu0 %432 }
 0x262   :  { %v373_v26 = vmul.f32 %v1202_v4, %v365_v24  ;;  %v374_v5 = vmul.f32 %v1202_v4, %v366_v14  ;;  %v413_v4 = vperm.slane %v1224_v15, 5  ;;  %v418_v17 = vmul.f32 %v414_v50, %v408_v54  ;;  %v931_v54 = vld [vmem:[%s1459_s1 + $0x38] ss:$0 sm:$0xff] }
 0x264   :  { %v377_v22 = vadd.f32 %v373_v26, %v344_v25  ;;  %v378_v1 = vadd.f32 %v374_v5, %v345_v46  ;;  %v417_v45 = vmul.f32 %v413_v4, %v409_v48  ;;  %v480_v5 = vperm.slane %v1255_v42, 7 }
 0x266   :  { %v1324_v29 = vadd.f32 %v393_v0, %v377_v22  ;;  %v400_v31 = vpop.permute.xlu1 %399  ;;  %v1326_v32 = vadd.f32 %v394_v28, %v378_v1  ;;  %v425_v63 = vmul.f32 %v1210_v10, %v417_v45 }
 0x267   :  { %v466_v62 = vpop.permute.xlu2 %465  ;;  %v410_v39 = vsel %vm407_vm9, %v400_v31, %v402_v40  ;;  %v411_v37 = vsel %vm407_vm9, %v1304_v53, %v400_v31  ;;  %v928_v53 = vld [vmem:[%s1459_s1 + $0x20] ss:$0 sm:$0xff] }
 0x268   :  { %v416_v46 = vmul.f32 %v412_v38, %v410_v39  ;;  %v429_v15 = vadd.f32 %v425_v63, %v396_v16  ;;  %v929_v16 = vld [vmem:[%s1459_s1 + $0x28] ss:$0 sm:$0xff]  ;;  %v419_v57 = vmul.f32 %v415_v58, %v411_v37 }
 0x269   :  { %v488_v26 = vpop.permute.xlu0 %487 }
 0x26a   :  { %v424_v6 = vmul.f32 %v1210_v10, %v416_v46 }
 0x26c   :  { %v428_v25 = vadd.f32 %v424_v6, %v1294_v44 }
 0x26e   :  { %v435_v33 = vpop.permute.xlu1 %434 }
 0x26f   :  { %v470_v34 = vpop.permute.xlu2 %469  ;;  %v442_v51 = vsel %vm440_vm10, %v435_v33, %v437_v20  ;;  %v443_v40 = vsel %vm440_vm10, %v433_v41, %v435_v33 }
 0x270   :  { %v449_v12 = vmul.f32 %v445_v55, %v443_v40  ;;  %v450_v7 = vmul.f32 %v446_v47, %v442_v51  ;;  %v426_v55 = vmul.f32 %v1210_v10, %v418_v17  ;;  %v930_v40 = vld [vmem:[%s1459_s1 + $0x30] ss:$0 sm:$0xff] }
 0x272   :  { %v457_v0 = vmul.f32 %v1218_v13, %v449_v12  ;;  %v458_v22 = vmul.f32 %v1218_v13, %v450_v7 }
 0x274   :  { %v461_v39 = vadd.f32 %v457_v0, %v428_v25 }
 0x276   :  { %v439_v56 = vpop.permute.xlu1 %438 }
 0x277   :  { %v1328_v35 = vpop.permute.xlu2 %498  ;;  %v441_v18 = vsel %vm440_vm10, %v437_v20, %v439_v56  ;;  %v444_v21 = vsel %vm440_vm10, %v439_v56, %v433_v41  ;;  %v481_v20 = vperm.slane %v1260_v43, 7  ;;  %v462_v41 = vadd.f32 %v458_v22, %v429_v15 }
 0x278   :  { %v451_v33 = vmul.f32 %v447_v27, %v441_v18  ;;  %v452_v56 = vmul.f32 %v448_v59, %v444_v21 }
 0x27a   :  { %v459_v47 = vmul.f32 %v1218_v13, %v451_v33 }
 0x27e   :  { %v468_v36 = vpop.permute.xlu1 %467 }
 0x27f   :  { %v1346_v52 = vpop.permute.xlu2 %502  ;;  %v475_v8 = vsel %vm473_vm11, %v468_v36, %v470_v34  ;;  %v476_v11 = vsel %vm473_vm11, %v466_v62, %v468_v36 }
 0x280   :  { %v482_v24 = vmul.f32 %v478_v60, %v476_v11  ;;  %v483_v14 = vmul.f32 %v479_v61, %v475_v8  ;;  %v430_v60 = vadd.f32 %v426_v55, %v1324_v29 }
 0x282   :  { %v490_v19 = vmul.f32 %v488_v26, %v482_v24  ;;  %v491_v36 = vmul.f32 %v488_v26, %v483_v14 }
 0x284   :  { %v494_v50 = vadd.f32 %v490_v19, %v461_v39  ;;  %v495_v51 = vadd.f32 %v491_v36, %v462_v41  ;;  %v549_v19 = vld [vmem:[%s1465_s7] sm:$0xff] }
 0x286   :  { %v472_v49 = vpop.permute.xlu1 %471 }
 0x287   :  { %v474_v1 = vsel %vm473_vm11, %v470_v34, %v472_v49  ;;  %v477_v28 = vsel %vm473_vm11, %v472_v49, %v466_v62  ;;  %v521_v43 = vpop.permute.xlu2 %520  ;;  %v427_v34 = vmul.f32 %v1210_v10, %v419_v57  ;;  %v460_v49 = vmul.f32 %v1218_v13, %v452_v56 }
 0x288   :  { %v484_v48 = vmul.f32 %v480_v5, %v474_v1  ;;  %v485_v62 = vmul.f32 %v481_v20, %v477_v28  ;;  %v463_v13 = vadd.f32 %v459_v47, %v430_v60 }
 0x289   :  { %v431_v58 = vadd.f32 %v427_v34, %v1326_v32 }
 0x28a   :  { %v492_v61 = vmul.f32 %v488_v26, %v484_v48  ;;  %v493_v10 = vmul.f32 %v488_v26, %v485_v62  ;;  %v562_v48 = vld [vmem:[%s1466_s8] sm:$0xff] }
 0x28b   :  { %v464_v11 = vadd.f32 %v460_v49, %v431_v58 }
 0x28c   :  { %v496_v32 = vadd.f32 %v492_v61, %v463_v13 }
 0x28d   :  { %v497_v17 = vadd.f32 %v493_v10, %v464_v11  ;;  %v597_v11 = vld [vmem:[%s1467_s9] sm:$0x3] }
 0x28e   :  { %v501_v31 = vpop.permute.xlu1 %500 }
 0x28f   :  { %v508_v44 = vsel %vm506_vm12, %v501_v31, %v1346_v52  ;;  %v509_v42 = vsel %vm506_vm12, %v1328_v35, %v501_v31 }
 0x290   :  { %v515_v4 = vmul.f32 %v928_v53, %v509_v42  ;;  %v516_v38 = vmul.f32 %v929_v16, %v508_v44 }
 0x292   :  { %v523_v45 = vmul.f32 %v521_v43, %v515_v4  ;;  %v524_v46 = vmul.f32 %v521_v43, %v516_v38 }
 0x294   :  { %v527_v63 = vadd.f32 %v523_v45, %v494_v50  ;;  %v528_v6 = vadd.f32 %v524_v46, %v495_v51 }
 0x296   :  { %v505_v8 = vpop.permute.xlu1 %504  ;;  %v536_v59 = vmul.f32 %v527_v63, %v527_v63  ;;  %v537_v18 = vmul.f32 %v528_v6, %v528_v6  ;;  %v531_v14 = vadd.f32 %v528_v6, %v527_v63 }
 0x297   :  { %v507_v37 = vsel %vm506_vm12, %v1346_v52, %v505_v8  ;;  %v510_v12 = vsel %vm506_vm12, %v505_v8, %v1328_v35  ;;  %v598_v35 = vld [vmem:[%s1468_s10] sm:$0x3] }
 0x298   :  { %v517_v7 = vmul.f32 %v930_v40, %v507_v37  ;;  %v518_v27 = vmul.f32 %v931_v54, %v510_v12  ;;  %v540_v57 = vadd.f32 %v537_v18, %v536_v59  ;;  %v630_v12 = vld [vmem:[%s1470_s12] sm:$0xff] }
 0x29a   :  { %v525_v29 = vmul.f32 %v521_v43, %v517_v7  ;;  %v526_v15 = vmul.f32 %v521_v43, %v518_v27 }
 0x29c   :  { %v529_v21 = vadd.f32 %v525_v29, %v496_v32  ;;  %v530_v24 = vadd.f32 %v526_v15, %v497_v17  ;;  %v629_v29 = vld [vmem:[%s1469_s11] sm:$0xff] }
 0x29e   :  { %v532_v53 = vadd.f32 %v531_v14, %v529_v21  ;;  %v538_v16 = vmul.f32 %v529_v21, %v529_v21  ;;  %v539_v52 = vmul.f32 %v530_v24, %v530_v24 }
 0x2a0   :  { %v533_v25 = vadd.f32 %v532_v53, %v530_v24  ;;  %v541_v26 = vadd.f32 %v540_v57, %v538_v16 }
 0x2a2   :  { %534 = vadd.xlane.f32.xlu1 %v533_v25  ;;  %v542_v9 = vadd.f32 %v541_v26, %v539_v52 }
 0x2a4   :  { %543 = vadd.xlane.f32.xlu2 %v542_v9 }
 0x2bb   :  { %601 = vperm.xlu1 %921, %v598_v35  }
 0x315   :  { %v535_v5 = vpop.xlane.xlu1 %534 }
 0x316   :  { %v545_v20 = vmul.f32 0.001953125, %v535_v5 }
 0x317   :  { %v544_v0 = vpop.xlane.xlu2 %543 }
 0x318   :  { %v547_v22 = vmul.f32 %v545_v20, %v545_v20  ;;  %v546_v1 = vmul.f32 0.001953125, %v544_v0 }
 0x31a   :  { %v548_v28 = vsub.f32 %v546_v1, %v547_v22 }
 0x31c   :  { %v550_v31 = vadd.f32 1e-05, %v548_v28 }
 0x31e   :  { %934 = vrsqrt.f32 %v550_v31  ;;  %vm557_vm14 = vweird.f32 %v550_v31 }
 0x324   :  { %v935_v33 = vpop.eup %934 }
 0x325   :  { %v552_v56 = vmul.f32 %v935_v33, %v550_v31  ;;  %vm558_vm13 = vweird.f32 %v935_v33 }
 0x326   :  { %vm559_vm15 = vmor %vm557_vm14, %vm558_vm13 }
 0x327   :  { %v553_v44 = vmul.f32 %v935_v33, %v552_v56  ;;  %v696_v56 = vld [vmem:[%s1471_s13] sm:$0xf] }
 0x329   :  { %v554_v42 = vmul.f32 0.5, %v553_v44 }
 0x32b   :  { %v555_v43 = vsub.f32 1.5, %v554_v42 }
 0x32d   :  { %v556_v36 = vmul.f32 %v935_v33, %v555_v43  ;;  %v602_v7 = vpop.permute.xlu1 %601 }
 0x32f   :  { %v560_v4 = vsel %vm559_vm15, %v935_v33, %v556_v36 }
 0x330   :  { %v561_v38 = vmul.f32 %v560_v4, %v549_v19 }
 0x332   :  { %567 = vperm.xlu0 %924, %v561_v38   ;;  %v563_v34 = vmul.f32 %v561_v38, %v545_v20 }
 0x334   :  { %v564_v62 = vsub.f32 %v562_v48, %v563_v34 }
 0x33a   :  { %576 = vperm.xlu0 %924, %v564_v62  }
 0x342   :  { %926 = vset.pattern.permute.xlu0 %v999_v30 }
 0x3a4   :  { %v568_v39 = vpop.permute.xlu0 %567 }
 0x3a5   :  { %v570_v41 = vmul.f32 %v568_v39, %v527_v63  ;;  %v571_v45 = vmul.f32 %v568_v39, %v528_v6  ;;  %v572_v46 = vmul.f32 %v568_v39, %v529_v21  ;;  %v573_v55 = vmul.f32 %v568_v39, %v530_v24 }
 0x3ac   :  { %v577_v47 = vpop.permute.xlu0 %576 }
 0x3ad   :  { %v581_v49 = vadd.f32 %v577_v47, %v572_v46  ;;  %v582_v50 = vadd.f32 %v577_v47, %v573_v55  ;;  %v579_v51 = vadd.f32 %v577_v47, %v570_v41  ;;  %v580_v40 = vadd.f32 %v577_v47, %v571_v45 }
 0x3af   :  { %v585_v54 = vmax.f32 %v581_v49, 0.0  ;;  %v586_v58 = vmax.f32 %v582_v50, 0.0  ;;  %v583_v60 = vmax.f32 %v579_v51, 0.0  ;;  %v584_v61 = vmax.f32 %v580_v40, 0.0 }
 0x3b1   :  { %v591_v10 = vadd.f32 %v586_v58, %v585_v54  ;;  %v587_v8 = vadd.f32 %v584_v61, %v583_v60 }
 0x3b3   :  { %592 = vadd.xlane.f32.xlu2 %v591_v10  ;;  %588 = vadd.xlane.f32.xlu0 %v587_v8 }
 0x3cb   :  { %633 = vperm.xlu2 %925, %v630_v12  }
 0x426   :  { %v593_v13 = vpop.xlane.xlu2 %592  ;;  %v589_v30 = vpop.xlane.xlu0 %588 }
 0x427   :  { %v594_v63 = vmul.f32 0.00390625, %v593_v13  ;;  %v590_v6 = vmul.f32 0.00390625, %v589_v30 }
 0x429   :  { %v596_v37 = vsel %vm595_vm1, %v590_v6, %v594_v63 }
 0x42a   :  { %623 = vmatpush.msrb.mxu0 %v596_v37 }
 0x42b   :  { %885 = vmatmul.msk.f32.vlgmr.msrb.gmra.mxu0 %vm604_vm2, %v597_v11 }
 0x42e   :  { %v634_v15 = vpop.permute.xlu2 %633 }
 0x4a8   :  { %v625_v27 = vpop.f32.mrf.mxu0 }
 0x4a9   :  { %v626_v32 = vadd.f32 %v625_v27, %v602_v7  ;;  %v806_v7 = vld [vmem:[%s1472_s14] sm:$0xf]  ;;  %s1014_s14 = smov [#allocation6]  }
 0x4ab   :  { %v628_v17 = vmax.f32 %v626_v32, 0.0 }
 0x4ad   :  { %886 = vmatpush.msk.msrb.mxu1 %vm640_vm3, %v628_v17 }
 0x4ae   :  { %887 = vmatmul.msk.f32.vlgmr.msrb.gmra.mxu1 %vm636_vm4, %v629_v29  ;;  %v819_v29 = vld [vmem:[%s1473_s15] sm:$0xf]  ;;  %s861_s15 = sshll.u32 %s1014_s14, 4  ;;  %s862_s15 = int_to_ptr.vmem [resolvable:$true] %s861_s15 }
 0x52b   :  { %v661_v59 = vpop.f32.mrf.mxu1 }
 0x52c   :  { %v662_v18 = vadd.f32 %v661_v59, %v634_v15 }
 0x52e   :  { %v888_v21 = vmul.f32 -1.442695, %v662_v18 }
 0x530   :  { %936 = vpow2.f32 %v888_v21 }
 0x536   :  { %v937_v24 = vpop.eup %936 }
 0x537   :  { %v667_v14 = vadd.f32 1.0, %v937_v24 }
 0x539   :  { %938 = vrcp.f32 %v667_v14  ;;  %v679_v25 = vand.u32 2147483648, %v667_v14  ;;  %v677_v26 = vand.u32 2147483647, %v667_v14  ;;  %vm673_vm6 = vweird.f32 %v667_v14 }
 0x53b   :  { %v680_v35 = vor.u32 1.1754944e-38, %v679_v25  ;;  %vm678_vm8 = vcmp.eq.f32.partialorder %v677_v26, 8.507059e+37 }
 0x53f   :  { %v939_v53 = vpop.eup %938 }
 0x540   :  { %v669_v16 = vmul.f32 %v939_v53, %v667_v14  ;;  %vm674_vm5 = vweird.f32 %v939_v53 }
 0x541   :  { %vm675_vm7 = vmor %vm673_vm6, %vm674_vm5 }
 0x542   :  { %v670_v57 = vsub.f32 1.0, %v669_v16 }
 0x544   :  { %v671_v52 = vmul.f32 %v939_v53, %v670_v57 }
 0x546   :  { %v672_v9 = vadd.f32 %v939_v53, %v671_v52 }
 0x548   :  { %v676_v5 = vsel %vm675_vm7, %v939_v53, %v672_v9 }
 0x549   :  { %v681_v20 = vsel %vm678_vm8, %v680_v35, %v676_v5  ;;  %v942_v35 = vld.sshfl [vmem:[#allocation1 + $0x8] sm:$0xff pattern:$0x75316420] }
 0x54a   :  { %689 = vperm.xlu0 %926, %v681_v20   ;;  %685 = vperm.xlu1 %921, %v681_v20  }
 0x552   :  { %927 = vset.pattern.permute.xlu0 %v998_v23 }
 0x5bc   :  { %v690_v0 = vpop.permute.xlu0 %689  ;;  %v686_v22 = vpop.permute.xlu1 %685 }
 0x5bd   :  { %v694_v1 = vmul.f32 %v690_v0, %v585_v54  ;;  %v695_v28 = vmul.f32 %v690_v0, %v586_v58  ;;  %v692_v31 = vmul.f32 %v686_v22, %v583_v60  ;;  %v693_v33 = vmul.f32 %v686_v22, %v584_v61  ;;  %v943_v0 = vld.sshfl [vmem:[#allocation1] sm:$0xff pattern:$0x75316420] }
 0x5bf   :  { %715 = vmatpush.msrb.mxu2 %v692_v31  ;;  %735 = vmatpush.msrb.mxu3 %v693_v33 }
 0x5c0   :  { %755 = vmatpush.msra.mxu0 %v694_v1  ;;  %775 = vmatpush.msra.mxu1 %v695_v28 }
 0x5c1   :  { %889 = vmatmul.msk.f32.vlgmr.msrb.gmra.mxu2 %vm604_vm2, %v696_v56  ;;  %890 = vmatmul.msk.f32.vlgmr.msrb.gmra.mxu3 %vm604_vm2, %v696_v56 }
 0x5c2   :  { %891 = vmatmul.msk.f32.vlgmr.msra.gmra.mxu0 %vm604_vm2, %v696_v56  ;;  %892 = vmatmul.msk.f32.vlgmr.msra.gmra.mxu1 %vm604_vm2, %v696_v56 }
 0x63f   :  { %v757_v23 = vpop.f32.mrf.mxu0  ;;  %v777_v44 = vpop.f32.mrf.mxu1 }
 0x640   :  { %v791_v42 = vmul.f32 %v757_v23, %v757_v23  ;;  %v783_v36 = vsel %vm90_vm0, %v757_v23, 0.0  ;;  %v792_v4 = vmul.f32 %v777_v44, %v777_v44  ;;  %v785_v55 = vsel %vm90_vm0, %v777_v44, 0.0 }
 0x642   :  { %v796_v46 = vsel %vm90_vm0, %v791_v42, 0.0  ;;  %v798_v50 = vsel %vm90_vm0, %v792_v4, 0.0 }
 0x644   :  { %v717_v43 = vpop.f32.mrf.mxu2  ;;  %v737_v19 = vpop.f32.mrf.mxu3 }
 0x645   :  { %v780_v38 = vsel %vm90_vm0, %v717_v43, 0.0  ;;  %v789_v34 = vmul.f32 %v717_v43, %v717_v43  ;;  %v781_v48 = vsel %vm90_vm0, %v737_v19, 0.0  ;;  %v790_v62 = vmul.f32 %v737_v19, %v737_v19 }
 0x646   :  { %v782_v39 = vadd.f32 %v781_v48, %v780_v38 }
 0x647   :  { %v793_v41 = vsel %vm90_vm0, %v789_v34, 0.0  ;;  %v794_v45 = vsel %vm90_vm0, %v790_v62, 0.0 }
 0x648   :  { %v795_v47 = vadd.f32 %v794_v45, %v793_v41  ;;  %v784_v49 = vadd.f32 %v783_v36, %v782_v39 }
 0x64a   :  { %v786_v51 = vadd.f32 %v785_v55, %v784_v49  ;;  %v797_v40 = vadd.f32 %v796_v46, %v795_v47 }
 0x64c   :  { %787 = vadd.xlane.f32.xlu2 %v786_v51  ;;  %v799_v54 = vadd.f32 %v798_v50, %v797_v40 }
 0x64e   :  { %800 = vadd.xlane.f32.xlu1 %v799_v54 }
 0x6bf   :  { %v788_v58 = vpop.xlane.xlu2 %787 }
 0x6c0   :  { %v802_v60 = vmul.f32 0.001953125, %v788_v58 }
 0x6c1   :  { %v801_v61 = vpop.xlane.xlu1 %800 }
 0x6c2   :  { %v804_v10 = vmul.f32 %v802_v60, %v802_v60  ;;  %v803_v8 = vmul.f32 0.001953125, %v801_v61 }
 0x6c4   :  { %v805_v13 = vsub.f32 %v803_v8, %v804_v10 }
 0x6c6   :  { %v807_v30 = vadd.f32 1e-05, %v805_v13 }
 0x6c8   :  { %940 = vrsqrt.f32 %v807_v30  ;;  %vm814_vm10 = vweird.f32 %v807_v30 }
 0x6ce   :  { %v941_v63 = vpop.eup %940 }
 0x6cf   :  { %v809_v6 = vmul.f32 %v941_v63, %v807_v30  ;;  %vm815_vm9 = vweird.f32 %v941_v63 }
 0x6d0   :  { %vm816_vm11 = vmor %vm814_vm10, %vm815_vm9 }
 0x6d1   :  { %v810_v11 = vmul.f32 %v941_v63, %v809_v6 }
 0x6d3   :  { %v811_v37 = vmul.f32 0.5, %v810_v11 }
 0x6d5   :  { %v812_v12 = vsub.f32 1.5, %v811_v37 }
 0x6d7   :  { %v813_v27 = vmul.f32 %v941_v63, %v812_v12 }
 0x6d9   :  { %v817_v32 = vsel %vm816_vm11, %v941_v63, %v813_v27 }
 0x6da   :  { %v818_v17 = vmul.f32 %v817_v32, %v806_v7 }
 0x6dc   :  { %824 = vperm.xlu0 %927, %v818_v17   ;;  %v820_v15 = vmul.f32 %v818_v17, %v802_v60 }
 0x6de   :  { %v821_v59 = vsub.f32 %v819_v29, %v820_v15 }
 0x6e0   :  { %833 = vperm.xlu2 %925, %v821_v59  }
 0x73a   :  { %v834_v16 = vpop.permute.xlu2 %833 }
 0x74e   :  { %v825_v18 = vpop.permute.xlu0 %824 }
 0x74f   :  { %v827_v21 = vmul.f32 %v825_v18, %v717_v43  ;;  %v828_v24 = vmul.f32 %v825_v18, %v737_v19  ;;  %v829_v14 = vmul.f32 %v825_v18, %v757_v23  ;;  %v830_v53 = vmul.f32 %v825_v18, %v777_v44 }
 0x751   :  { %v836_v57 = vadd.f32 %v834_v16, %v827_v21  ;;  %v837_v25 = vadd.f32 %v834_v16, %v828_v24  ;;  %v838_v52 = vadd.f32 %v834_v16, %v829_v14  ;;  %v839_v26 = vadd.f32 %v834_v16, %v830_v53 }
 0x753   :  { %v841_v9 = vadd.f32 %v837_v25, %v1113_v3  ;;  %v843_v5 = vadd.f32 %v942_v35, %v839_v26  ;;  %v840_v20 = vadd.f32 %v836_v57, %v1111_v2  ;;  %v842_v22 = vadd.f32 %v943_v0, %v838_v52 }
 0x755   :  { %v846_v1 = vrot.slane %v841_v9, 4  ;;  %v852_v28 = vrot.slane %v843_v5, 4 }
 0x757   :  { %v847_v31 = vsel %vm90_vm0, %v840_v20, %v846_v1  ;;  %v853_v3 = vsel %vm90_vm0, %v842_v22, %v852_v28 }
 0x758   :  { %849 = vst [vmem:[#allocation6] sm:$0xff] %v847_v31 }
 0x759   :  { %856 = vst [vmem:[#allocation6 + $0x8] sm:$0xff] %v853_v3 }
 0x75a   :  { %869 = dma.vmem_to_hbm [thread:$0]  %s862_s15, 256, %s864_s3, [#allocation5], %s1015_s0, %s1015_s0, %s1016_s30  }
 0x75b   :  { %994 = dma.done.wait [#allocation5], 256  }
 0x75c   :  { %995 = vsyncadd [#allocation5], 4294967040 }
 0x75d   :  { %874 = vsyncpa [#allocation4], 1 }
 0x75e   :  { %875 = vsyncpa [#allocation5], 1 }

</bundles_post_ra>
